<compile_context>
chip_gen: v6e
topology: v6e:2x2x1
jax: 0.10.0
libtpu: 0.0.40
codegen_flags: <defaults>
</compile_context>

<pallas_src>
import jax
import jax.numpy as jnp
from jax import lax
from jax.experimental import pallas as pl
from jax.experimental.pallas import tpu as pltpu


def _round_up(x: int, m: int) -> int:
    return ((x + m - 1) // m) * m


def _device_kind() -> str:
    try:
        return jax.devices()[0].device_kind.lower()
    except Exception:
        return ""


def _is_multi_tc(kind: str) -> bool:
    # Chips whose 2 TensorCores share the grid's "parallel" axes.
    return ("v7" in kind) or ("v4" in kind) or ("v5p" in kind)


def _make_weight_sum_kernel(*, t_total, t_tile, mask_t_tail, use_mxu):
    def kernel(a_ref, hs_ref, out_ref, acc_ref):
        # a_ref  : (Bb, Tt)       weights
        # hs_ref : (Bb, Tt, Ht)   hidden states
        # out_ref: (Bb, Ht)       written only on the last T step
        # acc_ref: (Bb, Ht) f32   VMEM accumulator, resident across the T grid axis
        t = pl.program_id(2)

        @pl.when(t == 0)
        def _init():
            acc_ref[...] = jnp.zeros_like(acc_ref)

        a_blk = a_ref[...]
        hs_blk = hs_ref[...]

        if mask_t_tail:
            # hs is NOT padded on the host: the last T block reads uninitialized VMEM
            # past row T. Zero those rows so garbage (possibly NaN/Inf) cannot reach
            # valid outputs; `a` tail rows are exact zeros (host-padded), so
            # (masked hs == 0) * (a == 0) contributes nothing.
            tt, ht = hs_blk.shape[1], hs_blk.shape[2]
            row = t * t_tile + lax.broadcasted_iota(jnp.int32, (tt, ht), 0)
            hs_blk = jnp.where((row < t_total)[None, :, :], hs_blk, 0)

        if use_mxu:
            # Batched (1,Tt)@(Tt,Ht) matvec on the MXU with f32 accumulation.
            # The size-1 'q' dim is kept on purpose: rank-3 batched einsum is the
            # well-trodden Mosaic dot_general path (a degenerate rank-2 lhs is not).
            partial = jnp.einsum(
                "bqt,bth->bqh", a_blk[:, None, :], hs_blk,
                preferred_element_type=jnp.float32)
            acc_ref[...] += partial[:, 0, :]
        else:
            # VPU multiply + sublane reduce: keeps the reduction off the MXU-push slot
            # (preferred on v7x, whose 3.2 TB/s HBM can expose the M=1 MXU matvec).
            prod = hs_blk.astype(jnp.float32) * a_blk.astype(jnp.float32)[:, :, None]
            acc_ref[...] += jnp.sum(prod, axis=1)

        @pl.when(t == pl.num_programs(2) - 1)
        def _finalize():
            out_ref[...] = acc_ref[...].astype(out_ref.dtype)

    return kernel


def weight_sum_pallas(hs: jax.Array, a: jax.Array, *, hs_block_bytes=None,
                      use_mxu=None) -> jax.Array:
    """Pallas WeightSum: hs (B,T,H), a (B,T) -> (B,H)."""
    B, T, H = hs.shape
    assert a.shape == (B, T)
    out_dtype = jnp.result_type(hs.dtype, a.dtype)
    itemsize = hs.dtype.itemsize

    kind = _device_kind()
    if use_mxu is None:
        use_mxu = "v7" not in kind                       # MXU on v5e/v6e, VPU on v7x
    if hs_block_bytes is None:
        hs_block_bytes = (8 << 20) if "v7" in kind else (16 << 20)
    vmem_limit = (48 << 20) if "v7" in kind else (64 << 20)

    # --- B tile: sublane dim of `a`/out blocks must be a multiple of 8 or full B.
    Bb = B if B <= 8 else 8

    # --- H tile: prefer Ht = H (fully contiguous hs DMA rows); tile only if a
    # (Bb, 128, H) slab would blow the per-step byte budget.
    if Bb * 128 * H * itemsize <= hs_block_bytes:
        Ht = H
    else:
        Ht = max(128, (hs_block_bytes // (Bb * 128 * itemsize)) // 128 * 128)
        if Ht >= H:
            Ht = H
    nb, nh = pl.cdiv(B, Bb), pl.cdiv(H, Ht)

    # --- multi-TC chips: guarantee >= 2 "parallel" tiles so no TensorCore idles.
    if _is_multi_tc(kind) and nb * nh < 2 and H >= 256:
        Ht = _round_up(pl.cdiv(H, 2), 128)
        nh = pl.cdiv(H, Ht)

    # --- T tile: largest slab within the byte budget; prefer a Tt dividing T exactly
    # (no padded traffic / mask); otherwise mask the tail in-kernel.
    tt_cap = max(128, (hs_block_bytes // (Bb * Ht * itemsize)) // 128 * 128)
    if T <= tt_cap:
        Tt = T
    else:
        Tt = next((c for c in range(tt_cap, 127, -128) if T % c == 0), tt_cap)
    nt = pl.cdiv(T, Tt)
    mask_t_tail = (T % Tt) != 0

    # Zero-pad `a` along T only (tiny). hs itself is never padded or copied.
    a_p = a
    Tp = nt * Tt
    if Tp != T:
        a_p = jnp.pad(a, ((0, 0), (0, Tp - T)))

    kernel = _make_weight_sum_kernel(
        t_total=T, t_tile=Tt, mask_t_tail=mask_t_tail, use_mxu=use_mxu)

    cost = pl.CostEstimate(
        flops=2 * B * T * H,
        transcendentals=0,
        bytes_accessed=int(hs.nbytes) + int(a_p.nbytes) + B * H * out_dtype.itemsize)

    return pl.pallas_call(
        kernel,
        out_shape=jax.ShapeDtypeStruct((B, H), out_dtype),
        grid_spec=pltpu.PrefetchScalarGridSpec(
            num_scalar_prefetch=0,
            grid=(nb, nh, nt),                               # reduction axis T last
            in_specs=[
                pl.BlockSpec((Bb, Tt), lambda b, h, t: (b, t)),          # a
                pl.BlockSpec((Bb, Tt, Ht), lambda b, h, t: (b, t, h)),   # hs
            ],
            out_specs=pl.BlockSpec((Bb, Ht), lambda b, h, t: (b, h)),
            scratch_shapes=[pltpu.VMEM((Bb, Ht), jnp.float32)],
        ),
        compiler_params=pltpu.CompilerParams(
            dimension_semantics=("parallel", "parallel", "arbitrary"),
            vmem_limit_bytes=vmem_limit,
        ),
        cost_estimate=cost,
    )(a_p, hs)


def weight_sum(hs: jax.Array, a: jax.Array) -> jax.Array:
    """WeightSum.forward. hs: (B,T,H), a: (B,T) -> (B,H)."""
    B, T, H = hs.shape
    # Sub-vreg-sized problems: pallas_call launch/grid overhead dominates; let XLA fuse.
    if B * T * H <= 8 * 128 * 128:
        return jnp.einsum("bth,bt->bh", hs, a)
    return weight_sum_pallas(hs, a)


if __name__ == "__main__":
    key = jax.random.PRNGKey(0)
    k1, k2, k3, k4, k5, k6 = jax.random.split(key, 6)

    # --- module-spec small shape (B=2, T=8, H=32); exercise both compute paths.
    # Values rounded through bf16 so the MXU default-precision path is exact.
    B, T, H = 2, 8, 32
    hs = jax.random.normal(k1, (B, T, H), jnp.float32).astype(jnp.bfloat16).astype(jnp.float32)
    a = jax.random.normal(k2, (B, T), jnp.float32).astype(jnp.bfloat16).astype(jnp.float32)
    ref = jnp.einsum("bth,bt->bh", hs, a)
    for mxu in (True, False):
        c = weight_sum_pallas(hs, a, use_mxu=mxu)
        jax.block_until_ready(c)
        assert c.shape == (B, H)
        assert jnp.allclose(c, ref, atol=1e-4, rtol=1e-4), f"small f32 mismatch (mxu={mxu})"

    # --- bf16, single full-size block through the public wrapper (device-default path).
    B2, T2, H2 = 3, 640, 256
    hs2 = jax.random.normal(k3, (B2, T2, H2), jnp.bfloat16)
    a2 = jax.random.normal(k4, (B2, T2), jnp.bfloat16)
    c2 = weight_sum(hs2, a2)
    jax.block_until_ready(c2)
    ref2 = jnp.einsum("bth,bt->bh", hs2.astype(jnp.float32), a2.astype(jnp.float32))
    assert c2.shape == (B2, H2)
    assert jnp.allclose(c2.astype(jnp.float32), ref2, atol=0.5, rtol=2e-2), "bf16 mismatch"

    # --- forced multi-tile path: unaligned T (in-kernel tail mask), tiled H, multi T steps.
    B3, T3, H3 = 4, 300, 256
    hs3 = jax.random.normal(k5, (B3, T3, H3), jnp.float32).astype(jnp.bfloat16).astype(jnp.float32)
    a3 = jax.random.normal(k6, (B3, T3), jnp.float32).astype(jnp.bfloat16).astype(jnp.float32)
    ref3 = jnp.einsum("bth,bt->bh", hs3, a3)
    for mxu in (True, False):
        c3 = weight_sum_pallas(hs3, a3, hs_block_bytes=256 * 1024, use_mxu=mxu)
        jax.block_until_ready(c3)
        assert c3.shape == (B3, H3)
        assert jnp.allclose(c3, ref3, atol=2e-3, rtol=2e-3), f"tiled/masked mismatch (mxu={mxu})"

    # --- tiny-problem fallback in the public wrapper (plain jnp, no kernel launch).
    c_small = weight_sum(hs, a)
    jax.block_until_ready(c_small)
    assert jnp.allclose(c_small, ref, atol=1e-4, rtol=1e-4)

    print("KERNEL_OK")
</pallas_src>

<mosaic_0001>
module attributes {stable_mosaic.version = 11 : i64} {
  func.func @kernel(%arg0: i32, %arg1: i32, %arg2: i32, %arg3: memref<2x8xf32, #tpu.memory_space<vmem>>, %arg4: memref<2x8x32xf32, #tpu.memory_space<vmem>>, %arg5: memref<2x32xf32, #tpu.memory_space<vmem>>, %arg6: memref<2x32xf32, #tpu.memory_space<vmem>>) attributes {dimension_semantics = [#tpu.dimension_semantics<parallel>, #tpu.dimension_semantics<parallel>, #tpu.dimension_semantics<arbitrary>], iteration_bounds = array<i64: 1, 1, 1>, scalar_prefetch = 0 : i64, scratch_operands = 1 : i64, tpu.core_type = #tpu.core_type<tc>, window_params = [{transform_indices = @transform_0, window_bounds = array<i64: 2, 8>}, {transform_indices = @transform_1, window_bounds = array<i64: 2, 8, 32>}, {transform_indices = @transform_2, window_bounds = array<i64: 2, 32>}]} {
    %c0_i32 = arith.constant 0 : i32
    %0 = arith.cmpi eq, %arg2, %c0_i32 : i32
    %1 = arith.extui %0 : i1 to i32
    %c0_i32_0 = arith.constant 0 : i32
    %2 = arith.cmpi ne, %1, %c0_i32_0 : i32
    scf.if %2 {
      %cst_11 = arith.constant 0.000000e+00 : f32
      %14 = vector.broadcast %cst_11 : f32 to vector<2x32xf32>
      %c0_12 = arith.constant 0 : index
      %c0_13 = arith.constant 0 : index
      %15 = vector.load %arg6[%c0_12, %c0_13] : memref<2x32xf32, #tpu.memory_space<vmem>>, vector<2x32xf32>
      tpu.vector_store %arg6[%c0_12, %c0_13], %14 {strides = array<i32>} : memref<2x32xf32, #tpu.memory_space<vmem>>, vector<2x32xf32>,
    } else {
    }
    %c0 = arith.constant 0 : index
    %c0_1 = arith.constant 0 : index
    %3 = vector.load %arg3[%c0, %c0_1] : memref<2x8xf32, #tpu.memory_space<vmem>>, vector<2x8xf32>
    %c0_2 = arith.constant 0 : index
    %c0_3 = arith.constant 0 : index
    %c0_4 = arith.constant 0 : index
    %4 = vector.load %arg4[%c0_2, %c0_3, %c0_4] : memref<2x8x32xf32, #tpu.memory_space<vmem>>, vector<2x8x32xf32>
    %5 = vector.shape_cast %3 : vector<2x8xf32> to vector<2x1x8xf32>
    "tpu.trace_start"() <{level = 10 : i32, message = "bqt,bth->bqh"}> : () -> ()
    %cst = arith.constant dense<0.000000e+00> : vector<2x1x32xf32>
    %6 = tpu.matmul %5, %4, %cst {dimension_numbers = #tpu.dot_dimension_numbers<[2], [1], [1], [2], [0, 0, 0, 1, 1, 2], [0], [0]>} : vector<2x1x8xf32>, vector<2x8x32xf32>, vector<2x1x32xf32> -> vector<2x1x32xf32>
    "tpu.trace_stop"() : () -> ()
    %c0_5 = arith.constant 0 : index
    %c0_6 = arith.constant 0 : index
    %7 = vector.load %arg6[%c0_5, %c0_6] : memref<2x32xf32, #tpu.memory_space<vmem>>, vector<2x32xf32>
    %8 = vector.shape_cast %6 : vector<2x1x32xf32> to vector<2x32xf32>
    %9 = arith.addf %7, %8 : vector<2x32xf32>
    %c0_7 = arith.constant 0 : index
    %c0_8 = arith.constant 0 : index
    %10 = vector.load %arg6[%c0_7, %c0_8] : memref<2x32xf32, #tpu.memory_space<vmem>>, vector<2x32xf32>
    tpu.vector_store %arg6[%c0_7, %c0_8], %9 {strides = array<i32>} : memref<2x32xf32, #tpu.memory_space<vmem>>, vector<2x32xf32>,
    %c0_i32_9 = arith.constant 0 : i32
    %11 = arith.cmpi eq, %arg2, %c0_i32_9 : i32
    %12 = arith.extui %11 : i1 to i32
    %c0_i32_10 = arith.constant 0 : i32
    %13 = arith.cmpi ne, %12, %c0_i32_10 : i32
    scf.if %13 {
      %c0_11 = arith.constant 0 : index
      %c0_12 = arith.constant 0 : index
      %14 = vector.load %arg6[%c0_11, %c0_12] : memref<2x32xf32, #tpu.memory_space<vmem>>, vector<2x32xf32>
      %c0_13 = arith.constant 0 : index
      %c0_14 = arith.constant 0 : index
      %15 = vector.load %arg5[%c0_13, %c0_14] : memref<2x32xf32, #tpu.memory_space<vmem>>, vector<2x32xf32>
      tpu.vector_store %arg5[%c0_13, %c0_14], %14 {strides = array<i32>} : memref<2x32xf32, #tpu.memory_space<vmem>>, vector<2x32xf32>,
    } else {
    }
    return
  }
  func.func @transform_0(%arg0: i32, %arg1: i32, %arg2: i32) -> (i32, i32) {
    %c0_i32 = arith.constant 0 : i32
    return %arg0, %arg2 : i32, i32
  }
  func.func @transform_1(%arg0: i32, %arg1: i32, %arg2: i32) -> (i32, i32, i32) {
    %c0_i32 = arith.constant 0 : i32
    return %arg0, %arg2, %arg1 : i32, i32, i32
  }
  func.func @transform_2(%arg0: i32, %arg1: i32, %arg2: i32) -> (i32, i32) {
    %c0_i32 = arith.constant 0 : i32
    return %arg0, %arg1 : i32, i32
  }
}

</mosaic_0001>

<bundles_post_ra>
// kernel: tpu_custom_call.1
= control target key start
LH: loop header
LB: loop body
LE: loop exit
PB: predicated region body
PF: predicated region fallthrough
CT: control target
= control target key end

     0   :  { %7 = vsyncpa [#allocation4], 0  ;;  %s372_s0 = inlined_call_operand.hbm [shape: f32[2,8], index: 0, kind: input, shape index: {}]   ;;  %s373_s1 = inlined_call_operand.hbm [shape: f32[2,8,32], index: 1, kind: input, shape index: {}]   ;;  %s374_s2 = inlined_call_operand.hbm [shape: f32[2,32], index: 2, kind: output, shape index: {}]  }
   0x1   :  { %8 = vsyncpa [#allocation7], 0 }
   0x2   :  { %9 = vsyncpa [#allocation5], 0  ;;  %s337_s9 = smov [#allocation3]   ;;  %s338_s11 = smov [#allocation6]  }
   0x3   :  { %s16_s10 = sshll.u32 %s337_s9, 4  ;;  %s25_s12 = sshll.u32 %s338_s11, 4  ;;  %s17_s10 = int_to_ptr.vmem [resolvable:$true] %s16_s10  ;;  %s26_s12 = int_to_ptr.vmem [resolvable:$true] %s25_s12 }
   0x4   :  { %s279_s13 = scalar_lea.vmem %s17_s10, 32  ;;  %p284_p1 = scmp.lt.s32.totalorder %s17_s10, %s17_s10 }
   0x5   :  { %p280_p0 = scmp.ne.s32.totalorder %s17_s10, %s279_s13  ;;  %p285_p2 = scmp.lt.s32.totalorder %s279_s13, %s279_s13 }
   0x7   :  { %p286_p3 = por %p285_p2, %p284_p1 }
   0x9   :  { %p287_p4 = pnand %p286_p3, %p280_p0 }
   0xb   :  { %290 = shalt.err (!%p287_p4)
}
   0xc   :  { %19 = dma.hbm_to_vmem [thread:$0]  %s372_s0, 32, %s17_s10, [#allocation4]  }
   0xd   :  { %s299_s16 = scalar_lea.vmem %s26_s12, 256  ;;  %p304_p6 = scmp.lt.s32.totalorder %s26_s12, %s26_s12 }
   0xe   :  { %p300_p5 = scmp.ne.s32.totalorder %s26_s12, %s299_s16  ;;  %p305_p7 = scmp.lt.s32.totalorder %s299_s16, %s299_s16 }
  0x10   :  { %p306_p8 = por %p305_p7, %p304_p6 }
  0x12   :  { %p307_p9 = pnand %p306_p8, %p300_p5 }
  0x14   :  { %310 = shalt.err (!%p307_p9)
}
  0x15   :  { %s339_s17 = smov 128   ;;  %s340_s18 = smov 8  }
  0x16   :  { %31 = dma.hbm_to_vmem [thread:$0]  %s373_s1, 256, %s26_s12, [#allocation7], %s339_s17, %s339_s17, %s340_s18  }
  0x17   :  { %331 = dma.done.wait [#allocation4], 32  }
  0x18   :  { %332 = vsyncadd [#allocation4], 4294967264 }
  0x19   :  { %333 = dma.done.wait [#allocation7], 256  }
  0x1a   :  { %334 = vsyncadd [#allocation7], 4294967040  ;;  %v59_v0 = vlaneseq  ;;  %v341_v1 = vmov 0.0   ;;  %v342_v2 = vmov 1966171168   ;;  %vm343_vm0 = vmmov 0  }
  0x1b   :  { %253 = vmatprep.subr.mxu0 %v341_v1  ;;  %258 = vmatprep.subr.mxu1 %v341_v1  ;;  %v57_v3 = vunpack.c.l.s4 %v342_v2  ;;  %vm70_vm1 = vcmask 64512   ;;  %v45_v7 = vld [vmem:[#allocation6] sm:$0xff]  ;;  %v46_v8 = vld [vmem:[#allocation6 + $0x8] sm:$0xff]  ;;  %vm42_vm2 = vcmask 254976   ;;  %vm219_vm3 = vcmask 1041409   ;;  %s344_s0 = smov [#allocation8]  }
  0x1c   :  { %255 = vmatprep.mubr.msk.f32.mxu0 %vm343_vm0, %v341_v1  ;;  %260 = vmatprep.mubr.msk.f32.mxu1 %vm343_vm0, %v341_v1  ;;  %v60_v4 = vshrl.u32 %v59_v0, 7  ;;  %v246_v9 = vld.sshfl [vmem:[#allocation3] sm:$0x11 pattern:$0x75316420]  ;;  %s236_s1 = sshll.u32 %s344_s0, 4  ;;  %s237_s1 = int_to_ptr.vmem [resolvable:$true] %s236_s1 }
  0x1d   :  { %v58_v5 = vunpack.c.0.s8 %v57_v3  ;;  %254 = vmatpush3.msra.mxu0 %v45_v7  ;;  %259 = vmatpush3.msra.mxu1 %v46_v8  ;;  %v55_v11 = vcombine.high %v246_v9, %v246_v9  ;;  %43 = vst.msk [vmem:[#allocation2] sm:$0x3] %vm42_vm2, %v341_v1  ;;  %s311_s21 = scalar_lea.vmem %s237_s1, 32  ;;  %p316_p11 = scmp.lt.s32.totalorder %s237_s1, %s237_s1 }
  0x1e   :  { %p312_p10 = scmp.ne.s32.totalorder %s237_s1, %s311_s21  ;;  %p317_p12 = scmp.lt.s32.totalorder %s311_s21, %s311_s21 }
  0x1f   :  { %v61_v6 = vsub.s32 %v58_v5, %v60_v4 }
  0x20   :  { %p318_p13 = por %p317_p12, %p316_p11 }
  0x21   :  { %v62_v10 = vrot.slane %v246_v9, %v61_v6  ;;  %v69_v12 = vrot.slane %v55_v11, %v61_v6 }
  0x22   :  { %p319_p0 = pnand %p318_p13, %p312_p10 }
  0x23   :  { %256 = vmatmul.mubr.msk.f32.vlgmr.msra.gmra.mxu0 %vm70_vm1, %v62_v10  ;;  %261 = vmatmul.mubr.msk.f32.vlgmr.msra.gmra.mxu1 %vm70_vm1, %v69_v12 }
  0x24   :  { %v215_v17 = vld [vmem:[#allocation2] sm:$0x3] }
  0xe3   :  { %v139_v13 = vpop.f32.mrf.mxu0  ;;  %v211_v14 = vpop.f32.mrf.mxu1 }
  0xe4   :  { %v218_v16 = vrot.slane %v211_v14, 7 }
  0xe5   :  { %v257_v15 = vpop.f32.mrf.mxu0  ;;  %v262_v18 = vpop.f32.mrf.mxu1 }
  0xe6   :  { %v220_v19 = vsel %vm219_vm3, %v218_v16, %v139_v13 }
  0xe7   :  { %v222_v20 = vadd.f32 %v220_v19, %v215_v17 }
  0xe9   :  { %224 = vst.msk [vmem:[#allocation2] sm:$0x3] %vm42_vm2, %v222_v20 }
  0xf0   :  { %v228_v21 = vld [vmem:[#allocation2] sm:$0x3] }
  0xf1   :  { %229 = vst.msk [vmem:[#allocation8] sm:$0x3] %vm42_vm2, %v228_v21 }
  0xf2   :  { %322 = shalt.err (!%p319_p0)
}
  0xf3   :  { %239 = dma.vmem_to_hbm [thread:$0]  %s237_s1, 32, %s374_s2, [#allocation5]  }
  0xf4   :  { %335 = dma.done.wait [#allocation5], 32  }
  0xf5   :  { %336 = vsyncadd [#allocation5], 4294967264 }
  0xf6   :  { %243 = vsyncpa [#allocation4], 1 }
  0xf7   :  { %244 = vsyncpa [#allocation7], 1 }
  0xf8   :  { %245 = vsyncpa [#allocation5], 1 }

</bundles_post_ra>
